<compile_context>
chip_gen: v5e
topology: v5e:2x2
jax: 0.10.0
libtpu: 0.0.40
codegen_flags: <defaults>
</compile_context>

<pallas_src>
import functools

import jax
import jax.numpy as jnp
from jax.experimental import pallas as pl
from jax.experimental.pallas import tpu as pltpu


def _stft_mag_kernel(xa_ref, xb_ref, w_ref, out_ref, *, n_taps, tl, c_sub):
    """One (batch, frame-tile) grid step.

    xa_ref : (1, stride, tl)    chunks [j*tl, (j+1)*tl); chunk samples on sublanes
    xb_ref : (1, stride, 128)   overlap tail: chunks [(j+1)*tl, (j+1)*tl + 128)
    w_ref  : (2*c_sub, n_fft)   fused [real ; imag] basis, channels on sublanes
    out_ref: (1, c_sub, tl)     magnitude (channels x frames) for this tile
    """
    # Contiguous chunk slab covering every sample needed by the tl frames.
    slab = jnp.concatenate([xa_ref[0], xb_ref[0]], axis=1)          # (stride, tl+128)

    # frames^T : row (k*stride + s), column r == sample ((r + k)*stride + s) of
    # this tile's signal window -> exactly the transposed frame matrix of the
    # stride-`stride` conv.  The k = 1..3 shifts are static lane relayouts
    # (XLU slot, hidden under the MXU); nothing is duplicated in HBM.
    rhs = jnp.concatenate([slab[:, k:k + tl] for k in range(n_taps)], axis=0)  # (n_fft, tl)

    # Single full-depth MXU pass: (2*c_sub, n_fft) @ (n_fft, tl), f32 accumulate.
    acc = jnp.dot(w_ref[...], rhs, preferred_element_type=jnp.float32)

    real = acc[:c_sub, :]        # sublane slices at multiples of 8 -> free
    imag = acc[c_sub:, :]
    out_ref[0, :, :] = jnp.sqrt(real * real + imag * imag).astype(out_ref.dtype)


def stft_conv_forward(x, forward_basis_buffer, n_fft=256, is_v4=False):
    stride = n_fft // 4
    n_taps = n_fft // stride                        # 4
    to_pad = int((n_fft - stride) / 2) if is_v4 else n_fft // 2
    cutoff = n_fft // 2 + 1

    B, T = x.shape
    x = x.astype(jnp.float32)

    # Reflect padding (matches F.pad(..., 'reflect')).
    xp = jnp.pad(x, ((0, 0), (to_pad, to_pad)), mode="reflect")
    Tp = xp.shape[1]
    L = (Tp - n_fft) // stride + 1                  # conv1d output length

    # Frame-tile size = MXU N dimension / output lanes per grid step.
    tl = 256 if L > 128 else 128
    nj = -(-L // tl)                                # frame tiles per batch row

    # Chunked signal, no sample duplication: chunk c = samples [c*stride, (c+1)*stride).
    # Layout (B, stride, nc): chunk samples on sublanes, chunks on lanes, so the
    # in-kernel frame assembly is pure lane shifts.
    nc = nj * tl + 128                              # + overlap / padding tail
    xp = jnp.pad(xp, ((0, 0), (0, nc * stride - Tp)))
    xt = jnp.transpose(xp.reshape(B, nc, stride), (0, 2, 1))     # (B, stride, nc)

    # Fused [real ; imag] weight, channels on sublanes, each half padded 129 -> 136.
    w = forward_basis_buffer[:, 0, :].astype(jnp.float32)        # (n_fft+2, n_fft)
    n_imag = w.shape[0] - cutoff
    c_sub = -(-cutoff // 8) * 8                                  # 136
    wr = jnp.pad(w[:cutoff], ((0, c_sub - cutoff), (0, 0)))      # (c_sub, n_fft)
    wi = jnp.pad(w[cutoff:], ((0, c_sub - n_imag), (0, 0)))      # (c_sub, n_fft)
    w2 = jnp.concatenate([wr, wi], axis=0)                       # (2*c_sub, n_fft)

    kernel = functools.partial(_stft_mag_kernel, n_taps=n_taps, tl=tl, c_sub=c_sub)

    tb = tl // 128   # overlap-tail block-index step (chunk axis, block size 128)

    out = pl.pallas_call(
        kernel,
        out_shape=jax.ShapeDtypeStruct((B, c_sub, nj * tl), jnp.float32),
        grid_spec=pltpu.PrefetchScalarGridSpec(
            num_scalar_prefetch=0,
            grid=(B, nj),
            in_specs=[
                # main chunk tile for this frame tile
                pl.BlockSpec((1, stride, tl), lambda b, j: (b, 0, j)),
                # 128-chunk overlap tail (last frames of the tile need 3 of them)
                pl.BlockSpec((1, stride, 128), lambda b, j: (b, 0, (j + 1) * tb)),
                # fused weight, grid-invariant (fetched once)
                pl.BlockSpec((2 * c_sub, n_fft), lambda b, j: (0, 0)),
            ],
            out_specs=pl.BlockSpec((1, c_sub, tl), lambda b, j: (b, 0, j)),
        ),
        compiler_params=pltpu.CompilerParams(
            dimension_semantics=("parallel", "parallel")),
    )(xt, xt, w2)

    # Output is already NCL; just drop the channel / frame padding (one cheap slice).
    return out[:, :cutoff, :L]                      # (B, cutoff, L)


def make_forward_basis(n_fft=256):
    # Deterministic, synthetic init: standard STFT Fourier basis that the
    # silero checkpoint stores in `forward_basis_buffer` (shape (n_fft+2, 1, n_fft)).
    cutoff = n_fft // 2 + 1
    eye = jnp.eye(n_fft, dtype=jnp.float32)
    fb = jnp.fft.fft(eye)                           # (n_fft, n_fft) complex
    basis = jnp.concatenate(
        [jnp.real(fb[:cutoff, :]), jnp.imag(fb[:cutoff, :])], axis=0
    ).astype(jnp.float32)                           # (n_fft+2, n_fft)
    return basis[:, None, :]                        # (n_fft+2, 1, n_fft)


def reference_forward(x, forward_basis_buffer, n_fft=256, is_v4=False):
    # Pure-JAX reference (same math as F.conv1d with stride == framing+matmul).
    stride = n_fft // 4
    to_pad = int((n_fft - stride) / 2) if is_v4 else n_fft // 2
    cutoff = n_fft // 2 + 1
    xp = jnp.pad(x.astype(jnp.float32), ((0, 0), (to_pad, to_pad)), mode="reflect")
    L = (xp.shape[1] - n_fft) // stride + 1
    idx = jnp.arange(L)[:, None] * stride + jnp.arange(n_fft)[None, :]
    frames = xp[:, idx]                             # (B, L, n_fft)
    w = forward_basis_buffer[:, 0, :].astype(jnp.float32)
    conv = jnp.einsum("blk,ck->bcl", frames, w)     # (B, n_fft+2, L)
    r, i = conv[:, :cutoff, :], conv[:, cutoff:, :]
    return jnp.sqrt(r * r + i * i)


if __name__ == "__main__":
    n_fft = 256
    B, T = 2, 512                                   # small but valid (T > n_fft//2)

    key = jax.random.PRNGKey(0)
    x = jax.random.normal(key, (B, T), dtype=jnp.float32)
    basis = make_forward_basis(n_fft)

    stft = jax.jit(functools.partial(stft_conv_forward, n_fft=n_fft, is_v4=False))
    out = jax.block_until_ready(stft(x, basis))

    ref = reference_forward(x, basis, n_fft=n_fft, is_v4=False)
    L = (T + 2 * (n_fft // 2) - n_fft) // (n_fft // 4) + 1
    assert out.shape == (B, n_fft // 2 + 1, L), out.shape
    if not jnp.allclose(out, ref, rtol=1e-3, atol=1e-3):
        err = float(jnp.max(jnp.abs(out - ref)))
        raise AssertionError(f"Pallas STFT_conv output mismatch vs reference (max abs err {err})")

    print("KERNEL_OK")
</pallas_src>

<mosaic_0001>
module attributes {stable_mosaic.version = 11 : i64} {
  func.func @_stft_mag_kernel(%arg0: i32, %arg1: i32, %arg2: memref<1x64x128xf32, #tpu.memory_space<vmem>>, %arg3: memref<1x64x128xf32, #tpu.memory_space<vmem>>, %arg4: memref<272x256xf32, #tpu.memory_space<vmem>>, %arg5: memref<1x136x128xf32, #tpu.memory_space<vmem>>) attributes {dimension_semantics = [#tpu.dimension_semantics<parallel>, #tpu.dimension_semantics<parallel>], iteration_bounds = array<i64: 2, 1>, scalar_prefetch = 0 : i64, scratch_operands = 0 : i64, tpu.core_type = #tpu.core_type<tc>, window_params = [{transform_indices = @transform_0, window_bounds = array<i64: 1, 64, 128>}, {transform_indices = @transform_1, window_bounds = array<i64: 1, 64, 128>}, {pipeline_mode = #tpu.pipeline_mode<synchronous>, transform_indices = @transform_2, window_bounds = array<i64: 272, 256>}, {transform_indices = @transform_3, window_bounds = array<i64: 1, 136, 128>}]} {
    %c0 = arith.constant 0 : index
    %c0_0 = arith.constant 0 : index
    %c0_1 = arith.constant 0 : index
    %0 = vector.load %arg2[%c0, %c0_0, %c0_1] : memref<1x64x128xf32, #tpu.memory_space<vmem>>, vector<1x64x128xf32>
    %1 = vector.shape_cast %0 : vector<1x64x128xf32> to vector<64x128xf32>
    %c0_2 = arith.constant 0 : index
    %c0_3 = arith.constant 0 : index
    %c0_4 = arith.constant 0 : index
    %2 = vector.load %arg3[%c0_2, %c0_3, %c0_4] : memref<1x64x128xf32, #tpu.memory_space<vmem>>, vector<1x64x128xf32>
    %3 = vector.shape_cast %2 : vector<1x64x128xf32> to vector<64x128xf32>
    %4 = tpu.concatenate %1, %3 in 1 : vector<64x128xf32>, vector<64x128xf32> -> vector<64x256xf32>
    %5 = vector.extract_strided_slice %4 {offsets = [0, 0], sizes = [64, 128], strides = [1, 1]} : vector<64x256xf32> to vector<64x128xf32>
    %6 = vector.extract_strided_slice %4 {offsets = [0, 1], sizes = [64, 128], strides = [1, 1]} : vector<64x256xf32> to vector<64x128xf32>
    %7 = vector.extract_strided_slice %4 {offsets = [0, 2], sizes = [64, 128], strides = [1, 1]} : vector<64x256xf32> to vector<64x128xf32>
    %8 = vector.extract_strided_slice %4 {offsets = [0, 3], sizes = [64, 128], strides = [1, 1]} : vector<64x256xf32> to vector<64x128xf32>
    %9 = tpu.concatenate %5, %6, %7, %8 in 0 : vector<64x128xf32>, vector<64x128xf32>, vector<64x128xf32>, vector<64x128xf32> -> vector<256x128xf32>
    %c0_5 = arith.constant 0 : index
    %c0_6 = arith.constant 0 : index
    %10 = vector.load %arg4[%c0_5, %c0_6] : memref<272x256xf32, #tpu.memory_space<vmem>>, vector<272x256xf32>
    %cst = arith.constant dense<0.000000e+00> : vector<272x128xf32>
    %11 = tpu.matmul %10, %9, %cst {dimension_numbers = #tpu.dot_dimension_numbers<[1], [0], [0], [1], [0, 0, 1, 1], [], []>} : vector<272x256xf32>, vector<256x128xf32>, vector<272x128xf32> -> vector<272x128xf32>
    %12 = vector.extract_strided_slice %11 {offsets = [0, 0], sizes = [136, 128], strides = [1, 1]} : vector<272x128xf32> to vector<136x128xf32>
    %13 = vector.extract_strided_slice %11 {offsets = [136, 0], sizes = [136, 128], strides = [1, 1]} : vector<272x128xf32> to vector<136x128xf32>
    %14 = arith.mulf %12, %12 : vector<136x128xf32>
    %15 = arith.mulf %13, %13 : vector<136x128xf32>
    %16 = arith.addf %14, %15 : vector<136x128xf32>
    %17 = math.sqrt %16 : vector<136x128xf32>
    %c0_7 = arith.constant 0 : index
    %c0_8 = arith.constant 0 : index
    %c0_9 = arith.constant 0 : index
    %18 = vector.load %arg5[%c0_7, %c0_8, %c0_9] : memref<1x136x128xf32, #tpu.memory_space<vmem>>, vector<1x136x128xf32>
    %19 = vector.shape_cast %18 : vector<1x136x128xf32> to vector<136x128xf32>
    %20 = vector.shape_cast %17 : vector<136x128xf32> to vector<1x136x128xf32>
    tpu.vector_store %arg5[%c0_7, %c0_8, %c0_9], %20 {strides = array<i32>} : memref<1x136x128xf32, #tpu.memory_space<vmem>>, vector<1x136x128xf32>,
    return
  }
  func.func @transform_0(%arg0: i32, %arg1: i32) -> (i32, i32, i32) {
    %c0_i32 = arith.constant 0 : i32
    %c0_i32_0 = arith.constant 0 : i32
    return %arg0, %c0_i32, %arg1 : i32, i32, i32
  }
  func.func @transform_1(%arg0: i32, %arg1: i32) -> (i32, i32, i32) {
    %c1_i32 = arith.constant 1 : i32
    %0 = arith.addi %arg1, %c1_i32 : i32
    %c1_i32_0 = arith.constant 1 : i32
    %1 = arith.muli %0, %c1_i32_0 : i32
    %c0_i32 = arith.constant 0 : i32
    %c0_i32_1 = arith.constant 0 : i32
    return %arg0, %c0_i32, %1 : i32, i32, i32
  }
  func.func @transform_2(%arg0: i32, %arg1: i32) -> (i32, i32) {
    %c0_i32 = arith.constant 0 : i32
    %c0_i32_0 = arith.constant 0 : i32
    %c0_i32_1 = arith.constant 0 : i32
    return %c0_i32, %c0_i32_0 : i32, i32
  }
  func.func @transform_3(%arg0: i32, %arg1: i32) -> (i32, i32, i32) {
    %c0_i32 = arith.constant 0 : i32
    %c0_i32_0 = arith.constant 0 : i32
    return %arg0, %c0_i32, %arg1 : i32, i32, i32
  }
}

</mosaic_0001>

<bundles_post_ra>
// kernel: stft_conv_forward.1
= control target key start
LH: loop header
LB: loop body
LE: loop exit
PB: predicated region body
PF: predicated region fallthrough
CT: control target
= control target key end

     0   :  { %s1531_s12 = smov 0   ;;  %s1533_s13 = smov 0   ;;  %s2033_s0 = inlined_call_operand.vmem [shape: f32[2,64,256], index: 0, kind: input, shape index: {}, may-alias: {0,1}]   ;;  %s2034_s1 = inlined_call_operand.vmem [shape: f32[2,64,256], index: 1, kind: input, shape index: {}, may-alias: {0,1}]   ;;  %s2035_s2 = inlined_call_operand.vmem [shape: f32[272,256], index: 2, kind: input, shape index: {}]   ;;  %s2036_s3 = inlined_call_operand.vmem [shape: f32[2,136,128], index: 3, kind: output, shape index: {}]  }
   0x1   :  { %s1535_s14 = smov 0   ;;  %s1537_s15 = smov 0  }
   0x2   :  { %s1539_s16 = smov 0  }
   0x3 LB: > { %s25_s17 = sadd.s32 1, %s1502_s15  ;;  %p41_p1 = scmp.ne.s32.totalorder %s1494_s13, %s1490_s12  ;;  %s1506_s16 = sphi %s1539_s16, %s13_s16   ;;  %s1502_s15 = sphi %s1537_s15, %s2041_s15   ;;  %s1498_s14 = sphi %s1535_s14, %s2040_s14   ;;  %s1494_s13 = sphi %s1533_s13, %s2039_s13   ;;  %s1490_s12 = sphi %s1531_s12, %s2038_s12  }
   0x4   : > { %p27_p0 = scmp.ge.s32.totalorder %s25_s17, 2  ;;  %p42_p2 = scmp.eq.s32.totalorder %s1506_s16, 0 }
   0x5   : > { %s34_s20 = sadd.s32 1, %s1494_s13  ;;  %p1215_p5 = scmp.ge.s32.totalorder %s1506_s16, 2 }
   0x6   : > { %s2043_s17 = smov (%p27_p0, %s25_s17), 0  ;;  %p1562_p3 = por %p42_p2, %p41_p1 }
   0x7   : > { %s29_s19 = ssub.s32 %s1502_s15, %s2043_s17  ;;  %149 = sbr.rel (%p1215_p5) target bundleno = 36 (0x24), region = 20 }
   0x8   : > { %p32_p4 = scmp.eq.s32.totalorder %s29_s19, 0 }
   0xa   : > { %s1570_s21 = scalar_select %p32_p4, %s1494_s13, %s34_s20  }
   0xc   : > { %152 = sbr.rel (!%p1562_p3) target bundleno = 24 (0x18), region = 24  ;;  %s154_s22 = sand.u32 (%p1562_p3), 1, %s1494_s13  }
   0xd   : > { %s1236_s23 = sshll.u32 (%p1562_p3), %s1502_s15, 7  ;;  %s1216_s24 = sshll.u32 (%p1562_p3), %s154_s22, 6 }
   0xe   : > { %s160_s27 = scalar_lea.vmem (%p1562_p3), %s2033_s0, %s1236_s23  ;;  %s156_s28 = scalar_lea.vmem (%p1562_p3), [#allocation2], %s1216_s24 }
   0xf   : > { %v203_v0 = vld [vmem:[%s160_s27] sm:$0xff] (%p1562_p3)  ;;  %v205_v1 = vld [vmem:[%s160_s27 + $0x10] sm:$0xff] (%p1562_p3) }
  0x10   : > { %v207_v2 = vld [vmem:[%s160_s27 + $0x20] sm:$0xff] (%p1562_p3)  ;;  %204 = vst [vmem:[%s156_s28] sm:$0xff] (%p1562_p3), %v203_v0  ;;  %v209_v3 = vld [vmem:[%s160_s27 + $0x30] sm:$0xff] (%p1562_p3) }
  0x11   : > { %206 = vst [vmem:[%s156_s28 + $0x8] sm:$0xff] %v205_v1  ;;  %v211_v4 = vld [vmem:[%s160_s27 + $0x40] sm:$0xff]  ;;  %v213_v5 = vld [vmem:[%s160_s27 + $0x50] sm:$0xff] }
  0x12   : > { %208 = vst [vmem:[%s156_s28 + $0x10] sm:$0xff] %v207_v2  ;;  %v215_v6 = vld [vmem:[%s160_s27 + $0x60] sm:$0xff]  ;;  %v217_v7 = vld [vmem:[%s160_s27 + $0x70] sm:$0xff] }
  0x13   : > { %210 = vst [vmem:[%s156_s28 + $0x18] sm:$0xff] %v209_v3 }
  0x14   : > { %212 = vst [vmem:[%s156_s28 + $0x20] sm:$0xff] %v211_v4 }
  0x15   : > { %214 = vst [vmem:[%s156_s28 + $0x28] sm:$0xff] %v213_v5 }
  0x16   : > { %216 = vst [vmem:[%s156_s28 + $0x30] sm:$0xff] %v215_v6 }
  0x17   : > { %218 = vst [vmem:[%s156_s28 + $0x38] sm:$0xff] %v217_v7 }
  0x18 PF: > { %224 = sbr.rel (!%p1562_p3) target bundleno = 36 (0x24), region = 62  ;;  %s226_s29 = sand.u32 (%p1562_p3), 1, %s1494_s13  }
  0x19   : > { %s1237_s30 = sshll.u32 (%p1562_p3), %s1502_s15, 7  ;;  %s1219_s4 = sshll.u32 (%p1562_p3), %s226_s29, 6 }
  0x1a   : > { %s1144_s7 = scalar_lea.vmem (%p1562_p3), %s2034_s1, %s1237_s30  ;;  %s228_s8 = scalar_lea.vmem (%p1562_p3), [#allocation3], %s1219_s4 }
  0x1b   : > { %v1222_v8 = vld [vmem:[%s1144_s7 + $0x8] sm:$0xff] (%p1562_p3)  ;;  %v1223_v9 = vld [vmem:[%s1144_s7 + $0x18] sm:$0xff] (%p1562_p3) }
  0x1c   : > { %v1224_v10 = vld [vmem:[%s1144_s7 + $0x28] sm:$0xff] (%p1562_p3)  ;;  %277 = vst [vmem:[%s228_s8] sm:$0xff] (%p1562_p3), %v1222_v8  ;;  %v1225_v11 = vld [vmem:[%s1144_s7 + $0x38] sm:$0xff] (%p1562_p3) }
  0x1d   : > { %279 = vst [vmem:[%s228_s8 + $0x8] sm:$0xff] %v1223_v9  ;;  %v1226_v12 = vld [vmem:[%s1144_s7 + $0x48] sm:$0xff]  ;;  %v1227_v13 = vld [vmem:[%s1144_s7 + $0x58] sm:$0xff] }
  0x1e   : > { %281 = vst [vmem:[%s228_s8 + $0x10] sm:$0xff] %v1224_v10  ;;  %v1228_v14 = vld [vmem:[%s1144_s7 + $0x68] sm:$0xff]  ;;  %v1229_v15 = vld [vmem:[%s1144_s7 + $0x78] sm:$0xff] }
  0x1f   : > { %283 = vst [vmem:[%s228_s8 + $0x18] sm:$0xff] %v1225_v11 }
  0x20   : > { %285 = vst [vmem:[%s228_s8 + $0x20] sm:$0xff] %v1226_v12 }
  0x21   : > { %287 = vst [vmem:[%s228_s8 + $0x28] sm:$0xff] %v1227_v13 }
  0x22   : > { %289 = vst [vmem:[%s228_s8 + $0x30] sm:$0xff] %v1228_v14 }
  0x23   : > { %291 = vst [vmem:[%s228_s8 + $0x38] sm:$0xff] %v1229_v15 }
  0x24 PF: > { %p1230_p6 = scmp.ge.s32.totalorder %s1506_s16, 1  ;;  %p296_p7 = scmp.lt.s32.totalorder %s1506_s16, 3 }
  0x26   : > { %p297_p8 = pnand %p1230_p6, %p296_p7 }
  0x27   : > { %s303_s9 = sand.u32 (!%p297_p8), 1, %s1490_s12   ;;  %s1508_s12 = smov (!%p297_p8), 127  }
  0x28   : > { %300 = sbr.rel (%p297_p8) target bundleno = 516 (0x204), region = 100  ;;  %s1231_s10 = sshll.u32 (!%p297_p8), %s303_s9, 6 }
  0x29   : > { %s1590_s11 = scalar_lea.vmem (!%p297_p8), [#allocation2], %s1231_s10  ;;  %s1595_s18 = scalar_lea.vmem (!%p297_p8), [#allocation3], %s1231_s10 }
  0x2a   : > { %s1509_s19 = smov (!%p297_p8), 125   ;;  %s1510_s20 = smov (!%p297_p8), 126  }
  0x2b   : > { %p341_p9 = scmp.lt.s32.totalorder (!%p297_p8), %s1498_s14, 1 }
  0x2d   : > { %v1593_v16 = vld [vmem:[%s1590_s11 + $0x38] sm:$0xff]  ;;  %v1599_v18 = vld [vmem:[%s1590_s11 + $0x30] sm:$0xff]  ;;  %v1606_v22 = vld [vmem:[%s1590_s11 + $0x28] sm:$0xff]  ;;  %vm413_vm0 = vcmask 1039360   ;;  %vm511_vm1 = vcmask 1022976   ;;  %vm462_vm2 = vcmask 1031168  }
  0x2e   : > { %v364_v17 = vld [vmem:[%s1595_s18 + $0x38] sm:$0xff]  ;;  %v363_v20 = vld [vmem:[%s1595_s18 + $0x30] sm:$0xff]  ;;  %v362_v23 = vld [vmem:[%s1595_s18 + $0x28] sm:$0xff]  ;;  %s2045_s14 = smov (!%p341_p9, %s1498_s14), 1 }
  0x2f   : > { %v1314_v19 = vpack.i.bf16 %v364_v17, %v1593_v16  ;;  %v1324_v21 = vpack.i.bf16 %v363_v20, %v1599_v18  ;;  %v1334_v24 = vpack.i.bf16 %v362_v23, %v1606_v22  ;;  %v1613_v25 = vld [vmem:[%s1590_s11 + $0x20] sm:$0xff]  ;;  %v1618_v28 = vld [vmem:[%s1590_s11 + $0x18] sm:$0xff]  ;;  %v1624_v31 = vld [vmem:[%s1590_s11 + $0x10] sm:$0xff]  ;;  %s1270_s5 = smul.u32 136, %s2045_s14 }
  0x30   : > { %v361_v26 = vld [vmem:[%s1595_s18 + $0x20] sm:$0xff]  ;;  %v360_v29 = vld [vmem:[%s1595_s18 + $0x18] sm:$0xff]  ;;  %v359_v32 = vld [vmem:[%s1595_s18 + $0x10] sm:$0xff] }
  0x31   : > { %1315 = vrot.lane.b32.xlu0 %v1314_v19, %s1508_s12  ;;  %1325 = vrot.lane.b32.xlu1 %v1324_v21, %s1508_s12  ;;  %v1344_v27 = vpack.i.bf16 %v361_v26, %v1613_v25  ;;  %v1354_v30 = vpack.i.bf16 %v360_v29, %v1618_v28  ;;  %v1364_v33 = vpack.i.bf16 %v359_v32, %v1624_v31  ;;  %v1631_v34 = vld [vmem:[%s1590_s11 + $0x8] sm:$0xff]  ;;  %v1636_v37 = vld [vmem:[%s1590_s11] sm:$0xff]  ;;  %s1894_s8 = scalar_lea.vmem %s2036_s3, %s1270_s5 }
  0x32   : > { %1335 = vrot.lane.b32.xlu2 %v1334_v24, %s1508_s12  ;;  %v358_v35 = vld [vmem:[%s1595_s18 + $0x8] sm:$0xff]  ;;  %v357_v38 = vld [vmem:[%s1595_s18] sm:$0xff] }
  0x33   : > { %v1374_v36 = vpack.i.bf16 %v358_v35, %v1631_v34  ;;  %v1384_v39 = vpack.i.bf16 %v357_v38, %v1636_v37 }
  0x39   : > { %1320 = vrot.lane.b32.xlu0 %v1314_v19, %s1509_s19  ;;  %1330 = vrot.lane.b32.xlu1 %v1324_v21, %s1509_s19 }
  0x3a   : > { %1340 = vrot.lane.b32.xlu2 %v1334_v24, %s1509_s19 }
  0x41   : > { %1345 = vrot.lane.b32.xlu0 %v1344_v27, %s1508_s12  ;;  %1350 = vrot.lane.b32.xlu1 %v1344_v27, %s1509_s19 }
  0x42   : > { %1355 = vrot.lane.b32.xlu2 %v1354_v30, %s1508_s12 }
  0x49   : > { %1360 = vrot.lane.b32.xlu0 %v1354_v30, %s1509_s19  ;;  %1365 = vrot.lane.b32.xlu1 %v1364_v33, %s1508_s12 }
  0x4a   : > { %1370 = vrot.lane.b32.xlu2 %v1364_v33, %s1509_s19 }
  0x51   : > { %1375 = vrot.lane.b32.xlu0 %v1374_v36, %s1508_s12  ;;  %1380 = vrot.lane.b32.xlu1 %v1374_v36, %s1509_s19 }
  0x52   : > { %1385 = vrot.lane.b32.xlu2 %v1384_v39, %s1508_s12 }
  0x59   : > { %1390 = vrot.lane.b32.xlu0 %v1384_v39, %s1509_s19  ;;  %1395 = vrot.lane.b32.xlu1 %v1314_v19, %s1510_s20 }
  0x5a   : > { %1400 = vrot.lane.b32.xlu2 %v1324_v21, %s1510_s20 }
  0x61   : > { %1405 = vrot.lane.b32.xlu0 %v1334_v24, %s1510_s20  ;;  %1410 = vrot.lane.b32.xlu1 %v1344_v27, %s1510_s20 }
  0x62   : > { %1415 = vrot.lane.b32.xlu2 %v1354_v30, %s1510_s20 }
  0x69   : > { %1420 = vrot.lane.b32.xlu0 %v1364_v33, %s1510_s20  ;;  %1425 = vrot.lane.b32.xlu1 %v1374_v36, %s1510_s20 }
  0x6a   : > { %1430 = vrot.lane.b32.xlu2 %v1384_v39, %s1510_s20 }
  0x8c   : > { %v1336_v40 = vpop.permute.xlu2 %1335 }
  0x8d   : > { %v1338_v46 = vunpack.i.h.bf16 %v1336_v40  ;;  %v1337_v47 = vunpack.i.l.bf16 %v1336_v40 }
  0x8f   : > { %v419_v53 = vsel %vm413_vm0, %v1337_v47, %v1338_v46 }
  0x94   : > { %v1341_v41 = vpop.permute.xlu2 %1340 }
  0x95   : > { %v1343_v58 = vunpack.i.h.bf16 %v1341_v41  ;;  %v1342_v59 = vunpack.i.l.bf16 %v1341_v41 }
  0x97   : > { %v517_v0 = vsel %vm511_vm1, %v1342_v59, %v1343_v58 }
  0x9c   : > { %v1356_v52 = vpop.permute.xlu2 %1355 }
  0x9d   : > { %v1358_v2 = vunpack.i.h.bf16 %v1356_v52  ;;  %v1357_v3 = vunpack.i.l.bf16 %v1356_v52 }
  0x9f   : > { %v417_v11 = vsel %vm413_vm0, %v1357_v3, %v1358_v2 }
  0xa3   : > { %v1316_v42 = vpop.permute.xlu0 %1315  ;;  %v1326_v45 = vpop.permute.xlu1 %1325 }
  0xa4   : > { %v1318_v43 = vunpack.i.h.bf16 %v1316_v42  ;;  %v1317_v44 = vunpack.i.l.bf16 %v1316_v42  ;;  %v1328_v48 = vunpack.i.h.bf16 %v1326_v45  ;;  %v1327_v49 = vunpack.i.l.bf16 %v1326_v45  ;;  %v1371_v1 = vpop.permute.xlu2 %1370 }
  0xa5   : > { %v1373_v13 = vunpack.i.h.bf16 %v1371_v1  ;;  %v1372_v14 = vunpack.i.l.bf16 %v1371_v1 }
  0xa6   : > { %v421_v50 = vsel %vm413_vm0, %v1317_v44, %v1318_v43  ;;  %v420_v51 = vsel %vm413_vm0, %v1327_v49, %v1328_v48 }
  0xa7   : > { %596 = vmatpush.msra.mxu0 %v421_v50  ;;  %1238 = vmatpush.msra.mxu2 %v421_v50  ;;  %v514_v27 = vsel %vm511_vm1, %v1372_v14, %v1373_v13  ;;  %v530_v13 = vld [vmem:[%s2035_s2 + $0x10] sm:$0xff]  ;;  %v565_v14 = vld [vmem:[%s2035_s2 + $0x128] sm:$0xff] }
  0xa9   : > { %597 = vmatpush.msra.mxu0 %v420_v51  ;;  %1239 = vmatpush.msra.mxu2 %v420_v51 }
  0xab   : > { %v1321_v54 = vpop.permute.xlu0 %1320  ;;  %598 = vmatpush.msra.mxu0 %v419_v53  ;;  %1240 = vmatpush.msra.mxu2 %v419_v53  ;;  %v1331_v57 = vpop.permute.xlu1 %1330 }
  0xac   : > { %v1323_v55 = vunpack.i.h.bf16 %v1321_v54  ;;  %v1322_v56 = vunpack.i.l.bf16 %v1321_v54  ;;  %v1333_v60 = vunpack.i.h.bf16 %v1331_v57  ;;  %v1332_v61 = vunpack.i.l.bf16 %v1331_v57  ;;  %v1386_v17 = vpop.permute.xlu2 %1385 }
  0xad   : > { %v1388_v30 = vunpack.i.h.bf16 %v1386_v17  ;;  %v1387_v32 = vunpack.i.l.bf16 %v1386_v17  ;;  %v566_v17 = vld [vmem:[%s2035_s2 + $0x130] sm:$0xff] }
  0xae   : > { %v519_v62 = vsel %vm511_vm1, %v1322_v56, %v1323_v55  ;;  %v518_v63 = vsel %vm511_vm1, %v1332_v61, %v1333_v60 }
  0xaf   : > { %715 = vmatpush.msra.mxu1 %v519_v62  ;;  %1254 = vmatpush.msra.mxu3 %v519_v62  ;;  %v414_v43 = vsel %vm413_vm0, %v1387_v32, %v1388_v30  ;;  %v536_v30 = vld [vmem:[%s2035_s2 + $0x40] sm:$0xff]  ;;  %v571_v32 = vld [vmem:[%s2035_s2 + $0x158] sm:$0xff] }
  0xb1   : > { %716 = vmatpush.msra.mxu1 %v518_v63  ;;  %1255 = vmatpush.msra.mxu3 %v518_v63 }
  0xb3   : > { %717 = vmatpush.msra.mxu1 %v517_v0  ;;  %1256 = vmatpush.msra.mxu3 %v517_v0  ;;  %v1346_v4 = vpop.permute.xlu0 %1345  ;;  %v1351_v7 = vpop.permute.xlu1 %1350  ;;  %v562_v0 = vld [vmem:[%s2035_s2 + $0x110] sm:$0xff] }
  0xb4   : > { %v1348_v5 = vunpack.i.h.bf16 %v1346_v4  ;;  %v1347_v6 = vunpack.i.l.bf16 %v1346_v4  ;;  %v1353_v8 = vunpack.i.h.bf16 %v1351_v7  ;;  %v1352_v9 = vunpack.i.l.bf16 %v1351_v7  ;;  %v1401_v41 = vpop.permute.xlu2 %1400 }
  0xb5   : > { %v1403_v49 = vunpack.i.h.bf16 %v1401_v41  ;;  %v1402_v50 = vunpack.i.l.bf16 %v1401_v41  ;;  %v540_v41 = vld [vmem:[%s2035_s2 + $0x60] sm:$0xff] }
  0xb6   : > { %v418_v10 = vsel %vm413_vm0, %v1347_v6, %v1348_v5  ;;  %v516_v12 = vsel %vm511_vm1, %v1352_v9, %v1353_v8 }
  0xb7   : > { %599 = vmatpush.msra.mxu0 %v418_v10  ;;  %1241 = vmatpush.msra.mxu2 %v418_v10  ;;  %v563_v10 = vld [vmem:[%s2035_s2 + $0x118] sm:$0xff] }
  0xb8   : > { %718 = vmatpush.msra.mxu1 %v516_v12  ;;  %1257 = vmatpush.msra.mxu3 %v516_v12  ;;  %v564_v12 = vld [vmem:[%s2035_s2 + $0x120] sm:$0xff] }
  0xb9   : > { %600 = vmatpush.msra.mxu0 %v417_v11  ;;  %1242 = vmatpush.msra.mxu2 %v417_v11  ;;  %v529_v11 = vld [vmem:[%s2035_s2 + $0x8] sm:$0xff] }
  0xbb   : > { %v1361_v15 = vpop.permute.xlu0 %1360  ;;  %v1366_v21 = vpop.permute.xlu1 %1365 }
  0xbc   : > { %v1363_v19 = vunpack.i.h.bf16 %v1361_v15  ;;  %v1362_v20 = vunpack.i.l.bf16 %v1361_v15  ;;  %v1368_v23 = vunpack.i.h.bf16 %v1366_v21  ;;  %v1367_v24 = vunpack.i.l.bf16 %v1366_v21  ;;  %v1416_v55 = vpop.permute.xlu2 %1415  ;;  %v531_v15 = vld [vmem:[%s2035_s2 + $0x18] sm:$0xff]  ;;  %v533_v21 = vld [vmem:[%s2035_s2 + $0x28] sm:$0xff] }
  0xbd   : > { %v1418_v59 = vunpack.i.h.bf16 %v1416_v55  ;;  %v1417_v60 = vunpack.i.l.bf16 %v1416_v55  ;;  %v547_v55 = vld [vmem:[%s2035_s2 + $0x98] sm:$0xff] }
  0xbe   : > { %v515_v26 = vsel %vm511_vm1, %v1362_v20, %v1363_v19  ;;  %v416_v29 = vsel %vm413_vm0, %v1367_v24, %v1368_v23  ;;  %v532_v19 = vld [vmem:[%s2035_s2 + $0x20] sm:$0xff]  ;;  %v567_v20 = vld [vmem:[%s2035_s2 + $0x138] sm:$0xff]  ;;  %v534_v24 = vld [vmem:[%s2035_s2 + $0x30] sm:$0xff] }
  0xbf   : > { %719 = vmatpush.msra.mxu1 %v515_v26  ;;  %1258 = vmatpush.msra.mxu3 %v515_v26  ;;  %v466_v63 = vsel %vm462_vm2, %v1417_v60, %v1418_v59  ;;  %v568_v23 = vld [vmem:[%s2035_s2 + $0x140] sm:$0xff]  ;;  %v569_v26 = vld [vmem:[%s2035_s2 + $0x148] sm:$0xff]  ;;  %v550_v59 = vld [vmem:[%s2035_s2 + $0xb0] sm:$0xff] }
  0xc0   : > { %601 = vmatpush.msra.mxu0 %v416_v29  ;;  %1243 = vmatpush.msra.mxu2 %v416_v29  ;;  %v570_v29 = vld [vmem:[%s2035_s2 + $0x150] sm:$0xff]  ;;  %v585_v60 = vld [vmem:[%s2035_s2 + $0x1c8] sm:$0xff] }
  0xc1   : > { %720 = vmatpush.msra.mxu1 %v514_v27  ;;  %1259 = vmatpush.msra.mxu3 %v514_v27  ;;  %v535_v27 = vld [vmem:[%s2035_s2 + $0x38] sm:$0xff] }
  0xc3   : > { %v1376_v33 = vpop.permute.xlu0 %1375  ;;  %v1381_v38 = vpop.permute.xlu1 %1380 }
  0xc4   : > { %v1378_v35 = vunpack.i.h.bf16 %v1376_v33  ;;  %v1377_v36 = vunpack.i.l.bf16 %v1376_v33  ;;  %v1383_v39 = vunpack.i.h.bf16 %v1381_v38  ;;  %v1382_v40 = vunpack.i.l.bf16 %v1381_v38  ;;  %v537_v33 = vld [vmem:[%s2035_s2 + $0x48] sm:$0xff] }
  0xc5   : > { %v573_v38 = vld [vmem:[%s2035_s2 + $0x168] sm:$0xff] }
  0xc6   : > { %v415_v42 = vsel %vm413_vm0, %v1377_v36, %v1378_v35  ;;  %v513_v44 = vsel %vm511_vm1, %v1382_v40, %v1383_v39  ;;  %v572_v35 = vld [vmem:[%s2035_s2 + $0x160] sm:$0xff]  ;;  %v538_v36 = vld [vmem:[%s2035_s2 + $0x50] sm:$0xff]  ;;  %v539_v39 = vld [vmem:[%s2035_s2 + $0x58] sm:$0xff] }
  0xc7   : > { %602 = vmatpush.msra.mxu0 %v415_v42  ;;  %1244 = vmatpush.msra.mxu2 %v415_v42  ;;  %v574_v40 = vld [vmem:[%s2035_s2 + $0x170] sm:$0xff]  ;;  %v575_v42 = vld [vmem:[%s2035_s2 + $0x178] sm:$0xff] }
  0xc8   : > { %721 = vmatpush.msra.mxu1 %v513_v44  ;;  %1260 = vmatpush.msra.mxu3 %v513_v44  ;;  %v576_v44 = vld [vmem:[%s2035_s2 + $0x180] sm:$0xff] }
  0xc9   : > { %603 = vmatpush.msra.mxu0 %v414_v43  ;;  %1245 = vmatpush.msra.mxu2 %v414_v43  ;;  %v541_v43 = vld [vmem:[%s2035_s2 + $0x68] sm:$0xff] }
  0xcb   : > { %v1391_v45 = vpop.permute.xlu0 %1390  ;;  %1246 = vmatpush.msra.mxu2 %v1593_v16  ;;  %604 = vmatpush.msra.mxu0 %v1593_v16  ;;  %v1396_v48 = vpop.permute.xlu1 %1395  ;;  %v469_v16 = vsel %vm462_vm2, %v1402_v50, %v1403_v49  ;;  %v544_v49 = vld [vmem:[%s2035_s2 + $0x80] sm:$0xff]  ;;  %v579_v50 = vld [vmem:[%s2035_s2 + $0x198] sm:$0xff] }
  0xcc   : > { %v1393_v46 = vunpack.i.h.bf16 %v1391_v45  ;;  %v1392_v47 = vunpack.i.l.bf16 %v1391_v45  ;;  %v1398_v51 = vunpack.i.h.bf16 %v1396_v48  ;;  %v1397_v52 = vunpack.i.l.bf16 %v1396_v48  ;;  %v542_v45 = vld [vmem:[%s2035_s2 + $0x70] sm:$0xff] }
  0xcd   : > { %1247 = vmatpush.msra.mxu2 %v1599_v18  ;;  %605 = vmatpush.msra.mxu0 %v1599_v18  ;;  %v578_v48 = vld [vmem:[%s2035_s2 + $0x190] sm:$0xff] }
  0xce   : > { %v512_v53 = vsel %vm511_vm1, %v1392_v47, %v1393_v46  ;;  %v470_v54 = vsel %vm462_vm2, %v1397_v52, %v1398_v51  ;;  %v577_v46 = vld [vmem:[%s2035_s2 + $0x188] sm:$0xff]  ;;  %v543_v47 = vld [vmem:[%s2035_s2 + $0x78] sm:$0xff]  ;;  %v580_v52 = vld [vmem:[%s2035_s2 + $0x1a0] sm:$0xff] }
  0xcf   : > { %722 = vmatpush.msra.mxu1 %v512_v53  ;;  %1261 = vmatpush.msra.mxu3 %v512_v53  ;;  %v545_v51 = vld [vmem:[%s2035_s2 + $0x88] sm:$0xff]  ;;  %v546_v53 = vld [vmem:[%s2035_s2 + $0x90] sm:$0xff] }
  0xd0   : > { %1248 = vmatpush.msra.mxu2 %v1606_v22  ;;  %606 = vmatpush.msra.mxu0 %v1606_v22 }
  0xd1   : > { %723 = vmatpush.msra.mxu1 %v470_v54  ;;  %1262 = vmatpush.msra.mxu3 %v470_v54  ;;  %v581_v54 = vld [vmem:[%s2035_s2 + $0x1a8] sm:$0xff] }
  0xd2   : > { %1249 = vmatpush.msra.mxu2 %v1613_v25  ;;  %607 = vmatpush.msra.mxu0 %v1613_v25 }
  0xd3   : > { %v1406_v18 = vpop.permute.xlu0 %1405  ;;  %724 = vmatpush.msra.mxu1 %v469_v16  ;;  %1263 = vmatpush.msra.mxu3 %v469_v16  ;;  %v1411_v58 = vpop.permute.xlu1 %1410  ;;  %v582_v16 = vld [vmem:[%s2035_s2 + $0x1b0] sm:$0xff] }
  0xd4   : > { %v1408_v56 = vunpack.i.h.bf16 %v1406_v18  ;;  %v1407_v57 = vunpack.i.l.bf16 %v1406_v18  ;;  %1250 = vmatpush.msra.mxu2 %v1618_v28  ;;  %608 = vmatpush.msra.mxu0 %v1618_v28  ;;  %v1413_v61 = vunpack.i.h.bf16 %v1411_v58  ;;  %v1412_v22 = vunpack.i.l.bf16 %v1411_v58  ;;  %v1431_v28 = vpop.permute.xlu2 %1430  ;;  %v548_v18 = vld [vmem:[%s2035_s2 + $0xa0] sm:$0xff] }
  0xd5   : > { %v1433_v4 = vunpack.i.h.bf16 %v1431_v28  ;;  %v1432_v5 = vunpack.i.l.bf16 %v1431_v28  ;;  %v584_v58 = vld [vmem:[%s2035_s2 + $0x1c0] sm:$0xff] }
  0xd6   : > { %v468_v62 = vsel %vm462_vm2, %v1407_v57, %v1408_v56  ;;  %1251 = vmatpush.msra.mxu2 %v1624_v31  ;;  %609 = vmatpush.msra.mxu0 %v1624_v31  ;;  %v467_v25 = vsel %vm462_vm2, %v1412_v22, %v1413_v61  ;;  %v528_v31 = vld [vmem:[%s2035_s2] sm:$0xff]  ;;  %v583_v56 = vld [vmem:[%s2035_s2 + $0x1b8] sm:$0xff]  ;;  %v549_v57 = vld [vmem:[%s2035_s2 + $0xa8] sm:$0xff] }
  0xd7   : > { %725 = vmatpush.msra.mxu1 %v468_v62  ;;  %1264 = vmatpush.msra.mxu3 %v468_v62  ;;  %v551_v61 = vld [vmem:[%s2035_s2 + $0xb8] sm:$0xff]  ;;  %v586_v22 = vld [vmem:[%s2035_s2 + $0x1d0] sm:$0xff]  ;;  %v552_v62 = vld [vmem:[%s2035_s2 + $0xc0] sm:$0xff] }
  0xd8   : > { %1252 = vmatpush.msra.mxu2 %v1631_v34  ;;  %610 = vmatpush.msra.mxu0 %v1631_v34  ;;  %v588_v28 = vld [vmem:[%s2035_s2 + $0x1e0] sm:$0xff] }
  0xd9   : > { %726 = vmatpush.msra.mxu1 %v467_v25  ;;  %1265 = vmatpush.msra.mxu3 %v467_v25  ;;  %v587_v25 = vld [vmem:[%s2035_s2 + $0x1d8] sm:$0xff] }
  0xda   : > { %1253 = vmatpush.msra.mxu2 %v1636_v37  ;;  %611 = vmatpush.msra.mxu0 %v1636_v37  ;;  %v463_v37 = vsel %vm462_vm2, %v1432_v5, %v1433_v4  ;;  %v557_v4 = vld [vmem:[%s2035_s2 + $0xe8] sm:$0xff]  ;;  %v592_v5 = vld [vmem:[%s2035_s2 + $0x200] sm:$0xff] }
  0xdb   : > { %v1421_v1 = vpop.permute.xlu0 %1420  ;;  %727 = vmatpush.msra.mxu1 %v466_v63  ;;  %1266 = vmatpush.msra.mxu3 %v466_v63  ;;  %v1426_v3 = vpop.permute.xlu1 %1425  ;;  %v553_v63 = vld [vmem:[%s2035_s2 + $0xc8] sm:$0xff] }
  0xdc   : > { %v1423_v2 = vunpack.i.h.bf16 %v1421_v1  ;;  %v1422_v34 = vunpack.i.l.bf16 %v1421_v1  ;;  %663 = vmatmul.f32.vlgmr.msra.gmra.mxu2 %v562_v0  ;;  %612 = vmatmul.f32.vlgmr.msra.gmra.mxu0 %v528_v31  ;;  %v1428_v6 = vunpack.i.h.bf16 %v1426_v3  ;;  %v1427_v7 = vunpack.i.l.bf16 %v1426_v3  ;;  %v554_v0 = vld [vmem:[%s2035_s2 + $0xd0] sm:$0xff]  ;;  %v589_v31 = vld [vmem:[%s2035_s2 + $0x1e8] sm:$0xff]  ;;  %v555_v1 = vld [vmem:[%s2035_s2 + $0xd8] sm:$0xff] }
  0xdd   : > { %v591_v3 = vld [vmem:[%s2035_s2 + $0x1f8] sm:$0xff] }
  0xde   : > { %v465_v8 = vsel %vm462_vm2, %v1422_v34, %v1423_v2  ;;  %v464_v9 = vsel %vm462_vm2, %v1427_v7, %v1428_v6  ;;  %v590_v2 = vld [vmem:[%s2035_s2 + $0x1f0] sm:$0xff]  ;;  %v556_v34 = vld [vmem:[%s2035_s2 + $0xe0] sm:$0xff]  ;;  %v593_v7 = vld [vmem:[%s2035_s2 + $0x208] sm:$0xff] }
  0xdf   : > { %728 = vmatpush.msra.mxu1 %v465_v8  ;;  %1267 = vmatpush.msra.mxu3 %v465_v8  ;;  %v558_v6 = vld [vmem:[%s2035_s2 + $0xf0] sm:$0xff]  ;;  %v559_v8 = vld [vmem:[%s2035_s2 + $0xf8] sm:$0xff] }
  0xe1   : > { %729 = vmatpush.msra.mxu1 %v464_v9  ;;  %1268 = vmatpush.msra.mxu3 %v464_v9 }
  0xe3   : > { %730 = vmatpush.msra.mxu1 %v463_v37  ;;  %1269 = vmatpush.msra.mxu3 %v463_v37  ;;  %v594_v37 = vld [vmem:[%s2035_s2 + $0x210] sm:$0xff] }
  0xe4   : > { %782 = vmatmul.f32.vlgmr.msra.gmra.mxu3 %v563_v10  ;;  %731 = vmatmul.f32.vlgmr.msra.gmra.mxu1 %v529_v11  ;;  %v560_v10 = vld [vmem:[%s2035_s2 + $0x100] sm:$0xff] }
  0xe5   : > { %666 = vmatmul.f32.gmra.mxu2 %v564_v12  ;;  %615 = vmatmul.f32.gmra.mxu0 %v530_v13  ;;  %v595_v12 = vld [vmem:[%s2035_s2 + $0x218] sm:$0xff] }
  0xec   : > { %785 = vmatmul.f32.gmra.mxu3 %v565_v14  ;;  %734 = vmatmul.f32.gmra.mxu1 %v531_v15  ;;  %v561_v14 = vld [vmem:[%s2035_s2 + $0x108] sm:$0xff] }
  0xed   : > { %669 = vmatmul.f32.gmra.mxu2 %v566_v17  ;;  %618 = vmatmul.f32.gmra.mxu0 %v532_v19 }
  0xf4   : > { %788 = vmatmul.f32.gmra.mxu3 %v567_v20  ;;  %737 = vmatmul.f32.gmra.mxu1 %v533_v21 }
  0xf5   : > { %672 = vmatmul.f32.gmra.mxu2 %v568_v23  ;;  %621 = vmatmul.f32.gmra.mxu0 %v534_v24 }
  0xfc   : > { %791 = vmatmul.f32.gmra.mxu3 %v569_v26  ;;  %740 = vmatmul.f32.gmra.mxu1 %v535_v27 }
  0xfd   : > { %675 = vmatmul.f32.gmra.mxu2 %v570_v29  ;;  %624 = vmatmul.f32.gmra.mxu0 %v536_v30 }
 0x104   : > { %794 = vmatmul.f32.gmra.mxu3 %v571_v32  ;;  %743 = vmatmul.f32.gmra.mxu1 %v537_v33 }
 0x105   : > { %678 = vmatmul.f32.gmra.mxu2 %v572_v35  ;;  %627 = vmatmul.f32.gmra.mxu0 %v538_v36 }
 0x10c   : > { %797 = vmatmul.f32.gmra.mxu3 %v573_v38  ;;  %746 = vmatmul.f32.gmra.mxu1 %v539_v39 }
 0x10d   : > { %681 = vmatmul.f32.gmra.mxu2 %v574_v40  ;;  %630 = vmatmul.f32.gmra.mxu0 %v540_v41 }
 0x114   : > { %800 = vmatmul.f32.gmra.mxu3 %v575_v42  ;;  %749 = vmatmul.f32.gmra.mxu1 %v541_v43 }
 0x115   : > { %684 = vmatmul.f32.gmra.mxu2 %v576_v44  ;;  %633 = vmatmul.f32.gmra.mxu0 %v542_v45 }
 0x11c   : > { %803 = vmatmul.f32.gmra.mxu3 %v577_v46  ;;  %752 = vmatmul.f32.gmra.mxu1 %v543_v47 }
 0x11d   : > { %687 = vmatmul.f32.gmra.mxu2 %v578_v48  ;;  %636 = vmatmul.f32.gmra.mxu0 %v544_v49 }
 0x124   : > { %806 = vmatmul.f32.gmra.mxu3 %v579_v50  ;;  %755 = vmatmul.f32.gmra.mxu1 %v545_v51 }
 0x125   : > { %690 = vmatmul.f32.gmra.mxu2 %v580_v52  ;;  %639 = vmatmul.f32.gmra.mxu0 %v546_v53 }
 0x12c   : > { %809 = vmatmul.f32.gmra.mxu3 %v581_v54  ;;  %758 = vmatmul.f32.gmra.mxu1 %v547_v55 }
 0x12d   : > { %693 = vmatmul.f32.gmra.mxu2 %v582_v16  ;;  %642 = vmatmul.f32.gmra.mxu0 %v548_v18 }
 0x134   : > { %812 = vmatmul.f32.gmra.mxu3 %v583_v56  ;;  %761 = vmatmul.f32.gmra.mxu1 %v549_v57 }
 0x135   : > { %696 = vmatmul.f32.gmra.mxu2 %v584_v58  ;;  %645 = vmatmul.f32.gmra.mxu0 %v550_v59 }
 0x13c   : > { %815 = vmatmul.f32.gmra.mxu3 %v585_v60  ;;  %764 = vmatmul.f32.gmra.mxu1 %v551_v61 }
 0x13d   : > { %699 = vmatmul.f32.gmra.mxu2 %v586_v22  ;;  %648 = vmatmul.f32.gmra.mxu0 %v552_v62 }
 0x144   : > { %818 = vmatmul.f32.gmra.mxu3 %v587_v25  ;;  %767 = vmatmul.f32.gmra.mxu1 %v553_v63 }
 0x145   : > { %702 = vmatmul.f32.gmra.mxu2 %v588_v28  ;;  %651 = vmatmul.f32.gmra.mxu0 %v554_v0 }
 0x14c   : > { %821 = vmatmul.f32.gmra.mxu3 %v589_v31  ;;  %770 = vmatmul.f32.gmra.mxu1 %v555_v1 }
 0x14d   : > { %705 = vmatmul.f32.gmra.mxu2 %v590_v2  ;;  %654 = vmatmul.f32.gmra.mxu0 %v556_v34 }
 0x154   : > { %824 = vmatmul.f32.gmra.mxu3 %v591_v3  ;;  %773 = vmatmul.f32.gmra.mxu1 %v557_v4 }
 0x155   : > { %708 = vmatmul.f32.gmra.mxu2 %v592_v5  ;;  %657 = vmatmul.f32.gmra.mxu0 %v558_v6 }
 0x159   : > { %v613_v9 = vpop.f32.mrf.mxu0 }
 0x15c   : > { %827 = vmatmul.f32.gmra.mxu3 %v593_v7  ;;  %776 = vmatmul.f32.gmra.mxu1 %v559_v8 }
 0x15d   : > { %711 = vmatmul.f32.gmra.mxu2 %v594_v37  ;;  %660 = vmatmul.f32.gmra.mxu0 %v560_v10 }
 0x15f   : > { %v664_v11 = vpop.f32.mrf.mxu2 }
 0x161   : > { %v732_v13 = vpop.f32.mrf.mxu1 }
 0x162   : > { %v616_v15 = vpop.f32.mrf.mxu0  ;;  %v733_v17 = vadd.f32 %v732_v13, %v613_v9 }
 0x164   : > { %830 = vmatmul.f32.gmra.mxu3 %v595_v12  ;;  %779 = vmatmul.f32.gmra.mxu1 %v561_v14  ;;  %v834_v20 = vmul.f32 %v733_v17, %v733_v17 }
 0x167   : > { %v783_v19 = vpop.f32.mrf.mxu3 }
 0x168   : > { %v784_v21 = vadd.f32 %v783_v19, %v664_v11  ;;  %v667_v23 = vpop.f32.mrf.mxu2 }
 0x169   : > { %v735_v24 = vpop.f32.mrf.mxu1 }
 0x16a   : > { %v851_v26 = vmul.f32 %v784_v21, %v784_v21  ;;  %v619_v27 = vpop.f32.mrf.mxu0  ;;  %v736_v30 = vadd.f32 %v735_v24, %v616_v15 }
 0x16c   : > { %v868_v29 = vadd.f32 %v851_v26, %v834_v20  ;;  %v835_v33 = vmul.f32 %v736_v30, %v736_v30 }
 0x16e   : > { %1434 = vrsqrt.f32 %v868_v29  ;;  %vm892_vm3 = vcmp.eq.f32.partialorder %v868_v29, inf  ;;  %v895_v61 = vand.u32 2147483648, %v868_v29  ;;  %vm894_vm4 = vcmp.eq.f32.partialorder %v868_v29, 0.0 }
 0x16f   : > { %v786_v32 = vpop.f32.mrf.mxu3 }
 0x170   : > { %v787_v35 = vadd.f32 %v786_v32, %v667_v23  ;;  %v670_v36 = vpop.f32.mrf.mxu2 }
 0x171   : > { %v738_v38 = vpop.f32.mrf.mxu1 }
 0x172   : > { %v852_v39 = vmul.f32 %v787_v35, %v787_v35  ;;  %v622_v40 = vpop.f32.mrf.mxu0  ;;  %v739_v43 = vadd.f32 %v738_v38, %v619_v27 }
 0x174   : > { %v1435_v41 = vpop.eup %1434  ;;  %v869_v42 = vadd.f32 %v852_v39, %v835_v33  ;;  %v836_v47 = vmul.f32 %v739_v43, %v739_v43 }
 0x175   : > { %v886_v44 = vmul.f32 %v1435_v41, %v868_v29 }
 0x176   : > { %1436 = vrsqrt.f32 %v869_v42  ;;  %vm904_vm5 = vcmp.eq.f32.partialorder %v869_v42, inf  ;;  %v907_v10 = vand.u32 2147483648, %v869_v42  ;;  %vm906_vm6 = vcmp.eq.f32.partialorder %v869_v42, 0.0 }
 0x177   : > { %v887_v45 = vmul.f32 %v1435_v41, %v886_v44  ;;  %v789_v46 = vpop.f32.mrf.mxu3 }
 0x178   : > { %v790_v48 = vadd.f32 %v789_v46, %v670_v36  ;;  %v673_v49 = vpop.f32.mrf.mxu2 }
 0x179   : > { %v888_v50 = vmul.f32 0.5, %v887_v45  ;;  %v741_v51 = vpop.f32.mrf.mxu1 }
 0x17a   : > { %v853_v52 = vmul.f32 %v790_v48, %v790_v48  ;;  %v625_v53 = vpop.f32.mrf.mxu0  ;;  %v742_v18 = vadd.f32 %v741_v51, %v622_v40 }
 0x17b   : > { %v889_v54 = vsub.f32 1.5, %v888_v50 }
 0x17c   : > { %v1437_v55 = vpop.eup %1436  ;;  %v1888_v16 = vadd.f32 %v853_v52, %v836_v47  ;;  %v837_v22 = vmul.f32 %v742_v18, %v742_v18 }
 0x17d   : > { %v890_v56 = vmul.f32 %v1435_v41, %v889_v54  ;;  %v898_v57 = vmul.f32 %v1437_v55, %v869_v42 }
 0x17e   : > { %1438 = vrsqrt.f32 %v1888_v16  ;;  %vm916_vm7 = vcmp.eq.f32.partialorder %v1888_v16, inf  ;;  %v919_v36 = vand.u32 2147483648, %v1888_v16  ;;  %vm918_vm8 = vcmp.eq.f32.partialorder %v1888_v16, 0.0 }
 0x17f   : > { %v891_v58 = vmul.f32 %v890_v56, %v868_v29  ;;  %v899_v59 = vmul.f32 %v1437_v55, %v898_v57  ;;  %v792_v60 = vpop.f32.mrf.mxu3 }
 0x180   : > { %v793_v62 = vadd.f32 %v792_v60, %v673_v49  ;;  %v676_v25 = vpop.f32.mrf.mxu2 }
 0x181   : > { %v893_v63 = vsel %vm892_vm3, %v868_v29, %v891_v58  ;;  %v900_v28 = vmul.f32 0.5, %v899_v59  ;;  %v744_v0 = vpop.f32.mrf.mxu1 }
 0x182   : > { %v896_v31 = vsel %vm894_vm4, %v895_v61, %v893_v63  ;;  %v854_v1 = vmul.f32 %v793_v62, %v793_v62  ;;  %v628_v2 = vpop.f32.mrf.mxu0  ;;  %v745_v5 = vadd.f32 %v744_v0, %v625_v53 }
 0x183   : > { %1089 = vst [vmem:[%s1894_s8] sm:$0xff] %v896_v31  ;;  %v901_v34 = vsub.f32 1.5, %v900_v28 }
 0x184   : > { %v1439_v3 = vpop.eup %1438  ;;  %v1897_v4 = vadd.f32 %v854_v1, %v837_v22  ;;  %v838_v11 = vmul.f32 %v745_v5, %v745_v5 }
 0x185   : > { %v902_v6 = vmul.f32 %v1437_v55, %v901_v34  ;;  %v910_v7 = vmul.f32 %v1439_v3, %v1888_v16 }
 0x186   : > { %1440 = vrsqrt.f32 %v1897_v4  ;;  %vm928_vm9 = vcmp.eq.f32.partialorder %v1897_v4, inf  ;;  %vm930_vm10 = vcmp.eq.f32.partialorder %v1897_v4, 0.0 }
 0x187   : > { %v903_v8 = vmul.f32 %v902_v6, %v869_v42  ;;  %v911_v9 = vmul.f32 %v1439_v3, %v910_v7  ;;  %v795_v37 = vpop.f32.mrf.mxu3 }
 0x188   : > { %v796_v12 = vadd.f32 %v795_v37, %v676_v25  ;;  %v679_v13 = vpop.f32.mrf.mxu2 }
 0x189   : > { %v905_v14 = vsel %vm904_vm5, %v869_v42, %v903_v8  ;;  %v912_v15 = vmul.f32 0.5, %v911_v9  ;;  %v747_v17 = vpop.f32.mrf.mxu1 }
 0x18a   : > { %v908_v19 = vsel %vm906_vm6, %v907_v10, %v905_v14  ;;  %v855_v20 = vmul.f32 %v796_v12, %v796_v12  ;;  %v631_v21 = vpop.f32.mrf.mxu0  ;;  %v748_v27 = vadd.f32 %v747_v17, %v628_v2 }
 0x18b   : > { %1090 = vst [vmem:[%s1894_s8 + $0x8] sm:$0xff] %v908_v19  ;;  %v913_v23 = vsub.f32 1.5, %v912_v15 }
 0x18c   : > { %v1441_v24 = vpop.eup %1440  ;;  %v1902_v26 = vadd.f32 %v855_v20, %v838_v11  ;;  %v839_v38 = vmul.f32 %v748_v27, %v748_v27 }
 0x18d   : > { %v914_v29 = vmul.f32 %v1439_v3, %v913_v23  ;;  %v922_v30 = vmul.f32 %v1441_v24, %v1897_v4 }
 0x18e   : > { %1442 = vrsqrt.f32 %v1902_v26  ;;  %vm940_vm11 = vcmp.eq.f32.partialorder %v1902_v26, inf  ;;  %vm942_vm12 = vcmp.eq.f32.partialorder %v1902_v26, 0.0 }
 0x18f   : > { %v915_v32 = vmul.f32 %v914_v29, %v1888_v16  ;;  %v923_v33 = vmul.f32 %v1441_v24, %v922_v30  ;;  %v798_v35 = vpop.f32.mrf.mxu3 }
 0x190   : > { %v799_v39 = vadd.f32 %v798_v35, %v679_v13  ;;  %v682_v40 = vpop.f32.mrf.mxu2 }
 0x191   : > { %v917_v41 = vsel %vm916_vm7, %v1888_v16, %v915_v32  ;;  %v924_v42 = vmul.f32 0.5, %v923_v33  ;;  %v750_v43 = vpop.f32.mrf.mxu1  ;;  %v931_v16 = vand.u32 2147483648, %v1897_v4 }
 0x192   : > { %v920_v44 = vsel %vm918_vm8, %v919_v36, %v917_v41  ;;  %v856_v45 = vmul.f32 %v799_v39, %v799_v39  ;;  %v634_v46 = vpop.f32.mrf.mxu0  ;;  %v751_v50 = vadd.f32 %v750_v43, %v631_v21 }
 0x193   : > { %1091 = vst [vmem:[%s1894_s8 + $0x10] sm:$0xff] %v920_v44  ;;  %v925_v47 = vsub.f32 1.5, %v924_v42 }
 0x194   : > { %v1443_v48 = vpop.eup %1442  ;;  %v1912_v49 = vadd.f32 %v856_v45, %v839_v38  ;;  %v840_v18 = vmul.f32 %v751_v50, %v751_v50 }
 0x195   : > { %v926_v51 = vmul.f32 %v1441_v24, %v925_v47  ;;  %v934_v52 = vmul.f32 %v1443_v48, %v1902_v26 }
 0x196   : > { %1444 = vrsqrt.f32 %v1912_v49  ;;  %vm952_vm13 = vcmp.eq.f32.partialorder %v1912_v49, inf  ;;  %vm954_vm14 = vcmp.eq.f32.partialorder %v1912_v49, 0.0 }
 0x197   : > { %v927_v53 = vmul.f32 %v926_v51, %v1897_v4  ;;  %v935_v54 = vmul.f32 %v1443_v48, %v934_v52  ;;  %v801_v55 = vpop.f32.mrf.mxu3 }
 0x198   : > { %v802_v56 = vadd.f32 %v801_v55, %v682_v40  ;;  %v685_v57 = vpop.f32.mrf.mxu2 }
 0x199   : > { %v929_v58 = vsel %vm928_vm9, %v1897_v4, %v927_v53  ;;  %v936_v59 = vmul.f32 0.5, %v935_v54  ;;  %v753_v60 = vpop.f32.mrf.mxu1  ;;  %v943_v4 = vand.u32 2147483648, %v1902_v26 }
 0x19a   : > { %v932_v61 = vsel %vm930_vm10, %v931_v16, %v929_v58  ;;  %v857_v22 = vmul.f32 %v802_v56, %v802_v56  ;;  %v637_v62 = vpop.f32.mrf.mxu0  ;;  %v754_v0 = vadd.f32 %v753_v60, %v634_v46 }
 0x19b   : > { %1092 = vst [vmem:[%s1894_s8 + $0x18] sm:$0xff] %v932_v61  ;;  %v937_v25 = vsub.f32 1.5, %v936_v59 }
 0x19c   : > { %v1445_v63 = vpop.eup %1444  ;;  %v1922_v28 = vadd.f32 %v857_v22, %v840_v18  ;;  %v841_v5 = vmul.f32 %v754_v0, %v754_v0 }
 0x19d   : > { %v938_v31 = vmul.f32 %v1443_v48, %v937_v25  ;;  %v946_v1 = vmul.f32 %v1445_v63, %v1912_v49 }
 0x19e   : > { %1446 = vrsqrt.f32 %v1922_v28  ;;  %vm964_vm15 = vcmp.eq.f32.partialorder %v1922_v28, inf  ;;  %vm966_vm0 = vcmp.eq.f32.partialorder %v1922_v28, 0.0 }
 0x19f   : > { %v939_v2 = vmul.f32 %v938_v31, %v1902_v26  ;;  %v947_v34 = vmul.f32 %v1445_v63, %v946_v1  ;;  %v804_v3 = vpop.f32.mrf.mxu3 }
 0x1a0   : > { %v805_v6 = vadd.f32 %v804_v3, %v685_v57  ;;  %v688_v7 = vpop.f32.mrf.mxu2 }
 0x1a1   : > { %v941_v8 = vsel %vm940_vm11, %v1902_v26, %v939_v2  ;;  %v948_v9 = vmul.f32 0.5, %v947_v34  ;;  %v756_v37 = vpop.f32.mrf.mxu1  ;;  %v955_v26 = vand.u32 2147483648, %v1912_v49 }
 0x1a2   : > { %v944_v10 = vsel %vm942_vm12, %v943_v4, %v941_v8  ;;  %v858_v11 = vmul.f32 %v805_v6, %v805_v6  ;;  %v640_v12 = vpop.f32.mrf.mxu0  ;;  %v757_v17 = vadd.f32 %v756_v37, %v637_v62 }
 0x1a3   : > { %1093 = vst [vmem:[%s1894_s8 + $0x20] sm:$0xff] %v944_v10  ;;  %v949_v13 = vsub.f32 1.5, %v948_v9 }
 0x1a4   : > { %v1447_v14 = vpop.eup %1446  ;;  %v1932_v15 = vadd.f32 %v858_v11, %v841_v5  ;;  %v842_v27 = vmul.f32 %v757_v17, %v757_v17 }
 0x1a5   : > { %v950_v19 = vmul.f32 %v1445_v63, %v949_v13  ;;  %v958_v20 = vmul.f32 %v1447_v14, %v1922_v28 }
 0x1a6   : > { %1448 = vrsqrt.f32 %v1932_v15  ;;  %vm976_vm1 = vcmp.eq.f32.partialorder %v1932_v15, inf  ;;  %vm978_vm2 = vcmp.eq.f32.partialorder %v1932_v15, 0.0 }
 0x1a7   : > { %v951_v21 = vmul.f32 %v950_v19, %v1912_v49  ;;  %v959_v23 = vmul.f32 %v1447_v14, %v958_v20  ;;  %v807_v24 = vpop.f32.mrf.mxu3 }
 0x1a8   : > { %v808_v29 = vadd.f32 %v807_v24, %v688_v7  ;;  %v691_v30 = vpop.f32.mrf.mxu2 }
 0x1a9   : > { %v953_v32 = vsel %vm952_vm13, %v1912_v49, %v951_v21  ;;  %v960_v33 = vmul.f32 0.5, %v959_v23  ;;  %v759_v35 = vpop.f32.mrf.mxu1  ;;  %v967_v49 = vand.u32 2147483648, %v1922_v28 }
 0x1aa   : > { %v956_v36 = vsel %vm954_vm14, %v955_v26, %v953_v32  ;;  %v859_v38 = vmul.f32 %v808_v29, %v808_v29  ;;  %v643_v39 = vpop.f32.mrf.mxu0  ;;  %v760_v43 = vadd.f32 %v759_v35, %v640_v12 }
 0x1ab   : > { %1094 = vst [vmem:[%s1894_s8 + $0x28] sm:$0xff] %v956_v36  ;;  %v961_v40 = vsub.f32 1.5, %v960_v33 }
 0x1ac   : > { %v1449_v41 = vpop.eup %1448  ;;  %v1942_v42 = vadd.f32 %v859_v38, %v842_v27  ;;  %v843_v50 = vmul.f32 %v760_v43, %v760_v43 }
 0x1ad   : > { %v962_v44 = vmul.f32 %v1447_v14, %v961_v40  ;;  %v970_v45 = vmul.f32 %v1449_v41, %v1932_v15 }
 0x1ae   : > { %1450 = vrsqrt.f32 %v1942_v42  ;;  %vm988_vm3 = vcmp.eq.f32.partialorder %v1942_v42, inf  ;;  %vm990_vm4 = vcmp.eq.f32.partialorder %v1942_v42, 0.0 }
 0x1af   : > { %v963_v46 = vmul.f32 %v962_v44, %v1922_v28  ;;  %v971_v47 = vmul.f32 %v1449_v41, %v970_v45  ;;  %v810_v48 = vpop.f32.mrf.mxu3 }
 0x1b0   : > { %v811_v51 = vadd.f32 %v810_v48, %v691_v30  ;;  %v694_v52 = vpop.f32.mrf.mxu2 }
 0x1b1   : > { %v965_v53 = vsel %vm964_vm15, %v1922_v28, %v963_v46  ;;  %v972_v54 = vmul.f32 0.5, %v971_v47  ;;  %v762_v55 = vpop.f32.mrf.mxu1  ;;  %v979_v28 = vand.u32 2147483648, %v1932_v15 }
 0x1b2   : > { %v968_v16 = vsel %vm966_vm0, %v967_v49, %v965_v53  ;;  %v860_v18 = vmul.f32 %v811_v51, %v811_v51  ;;  %v646_v56 = vpop.f32.mrf.mxu0  ;;  %v763_v60 = vadd.f32 %v762_v55, %v643_v39 }
 0x1b3   : > { %1095 = vst [vmem:[%s1894_s8 + $0x30] sm:$0xff] %v968_v16  ;;  %v973_v57 = vsub.f32 1.5, %v972_v54 }
 0x1b4   : > { %v1451_v58 = vpop.eup %1450  ;;  %v1952_v59 = vadd.f32 %v860_v18, %v843_v50  ;;  %v844_v0 = vmul.f32 %v763_v60, %v763_v60 }
 0x1b5   : > { %v974_v61 = vmul.f32 %v1449_v41, %v973_v57  ;;  %v982_v22 = vmul.f32 %v1451_v58, %v1942_v42 }
 0x1b6   : > { %1452 = vrsqrt.f32 %v1952_v59  ;;  %vm1000_vm5 = vcmp.eq.f32.partialorder %v1952_v59, inf  ;;  %vm1002_vm6 = vcmp.eq.f32.partialorder %v1952_v59, 0.0 }
 0x1b7   : > { %v975_v62 = vmul.f32 %v974_v61, %v1932_v15  ;;  %v983_v25 = vmul.f32 %v1451_v58, %v982_v22  ;;  %v813_v63 = vpop.f32.mrf.mxu3 }
 0x1b8   : > { %v814_v31 = vadd.f32 %v813_v63, %v694_v52  ;;  %v697_v1 = vpop.f32.mrf.mxu2 }
 0x1b9   : > { %v977_v2 = vsel %vm976_vm1, %v1932_v15, %v975_v62  ;;  %v984_v34 = vmul.f32 0.5, %v983_v25  ;;  %v765_v3 = vpop.f32.mrf.mxu1  ;;  %v991_v15 = vand.u32 2147483648, %v1942_v42 }
 0x1ba   : > { %v980_v4 = vsel %vm978_vm2, %v979_v28, %v977_v2  ;;  %v861_v5 = vmul.f32 %v814_v31, %v814_v31  ;;  %v649_v6 = vpop.f32.mrf.mxu0  ;;  %v766_v37 = vadd.f32 %v765_v3, %v646_v56 }
 0x1bb   : > { %1096 = vst [vmem:[%s1894_s8 + $0x38] sm:$0xff] %v980_v4  ;;  %v985_v7 = vsub.f32 1.5, %v984_v34 }
 0x1bc   : > { %v1453_v8 = vpop.eup %1452  ;;  %v1962_v9 = vadd.f32 %v861_v5, %v844_v0  ;;  %v845_v17 = vmul.f32 %v766_v37, %v766_v37 }
 0x1bd   : > { %v986_v10 = vmul.f32 %v1451_v58, %v985_v7  ;;  %v994_v11 = vmul.f32 %v1453_v8, %v1952_v59 }
 0x1be   : > { %1454 = vrsqrt.f32 %v1962_v9  ;;  %vm1012_vm7 = vcmp.eq.f32.partialorder %v1962_v9, inf  ;;  %vm1014_vm8 = vcmp.eq.f32.partialorder %v1962_v9, 0.0 }
 0x1bf   : > { %v987_v12 = vmul.f32 %v986_v10, %v1942_v42  ;;  %v995_v13 = vmul.f32 %v1453_v8, %v994_v11  ;;  %v816_v14 = vpop.f32.mrf.mxu3 }
 0x1c0   : > { %v817_v19 = vadd.f32 %v816_v14, %v697_v1  ;;  %v700_v20 = vpop.f32.mrf.mxu2 }
 0x1c1   : > { %v989_v21 = vsel %vm988_vm3, %v1942_v42, %v987_v12  ;;  %v996_v23 = vmul.f32 0.5, %v995_v13  ;;  %v768_v24 = vpop.f32.mrf.mxu1  ;;  %v1003_v42 = vand.u32 2147483648, %v1952_v59 }
 0x1c2   : > { %v992_v26 = vsel %vm990_vm4, %v991_v15, %v989_v21  ;;  %v862_v27 = vmul.f32 %v817_v19, %v817_v19  ;;  %v652_v30 = vpop.f32.mrf.mxu0  ;;  %v769_v35 = vadd.f32 %v768_v24, %v649_v6 }
 0x1c3   : > { %1097 = vst [vmem:[%s1894_s8 + $0x40] sm:$0xff] %v992_v26  ;;  %v997_v29 = vsub.f32 1.5, %v996_v23 }
 0x1c4   : > { %v1455_v32 = vpop.eup %1454  ;;  %v1972_v33 = vadd.f32 %v862_v27, %v845_v17  ;;  %v846_v43 = vmul.f32 %v769_v35, %v769_v35 }
 0x1c5   : > { %v998_v36 = vmul.f32 %v1453_v8, %v997_v29  ;;  %v1006_v38 = vmul.f32 %v1455_v32, %v1962_v9 }
 0x1c6   : > { %1456 = vrsqrt.f32 %v1972_v33  ;;  %vm1024_vm9 = vcmp.eq.f32.partialorder %v1972_v33, inf  ;;  %vm1026_vm10 = vcmp.eq.f32.partialorder %v1972_v33, 0.0 }
 0x1c7   : > { %v999_v39 = vmul.f32 %v998_v36, %v1952_v59  ;;  %v1007_v40 = vmul.f32 %v1455_v32, %v1006_v38  ;;  %v819_v41 = vpop.f32.mrf.mxu3 }
 0x1c8   : > { %v820_v44 = vadd.f32 %v819_v41, %v700_v20  ;;  %v703_v45 = vpop.f32.mrf.mxu2 }
 0x1c9   : > { %v1001_v46 = vsel %vm1000_vm5, %v1952_v59, %v999_v39  ;;  %v1008_v47 = vmul.f32 0.5, %v1007_v40  ;;  %v771_v48 = vpop.f32.mrf.mxu1  ;;  %v1015_v59 = vand.u32 2147483648, %v1962_v9 }
 0x1ca   : > { %v1004_v49 = vsel %vm1002_vm6, %v1003_v42, %v1001_v46  ;;  %v863_v50 = vmul.f32 %v820_v44, %v820_v44  ;;  %v772_v54 = vadd.f32 %v771_v48, %v652_v30  ;;  %v655_v18 = vpop.f32.mrf.mxu0 }
 0x1cb   : > { %1098 = vst [vmem:[%s1894_s8 + $0x48] sm:$0xff] %v1004_v49  ;;  %v1009_v51 = vsub.f32 1.5, %v1008_v47 }
 0x1cc   : > { %v1457_v52 = vpop.eup %1456  ;;  %v1982_v53 = vadd.f32 %v863_v50, %v846_v43  ;;  %v847_v60 = vmul.f32 %v772_v54, %v772_v54 }
 0x1cd   : > { %v1010_v55 = vmul.f32 %v1455_v32, %v1009_v51  ;;  %v1018_v16 = vmul.f32 %v1457_v52, %v1972_v33 }
 0x1ce   : > { %1458 = vrsqrt.f32 %v1982_v53  ;;  %vm1036_vm11 = vcmp.eq.f32.partialorder %v1982_v53, inf  ;;  %v1039_v32 = vand.u32 2147483648, %v1982_v53  ;;  %vm1038_vm12 = vcmp.eq.f32.partialorder %v1982_v53, 0.0 }
 0x1cf   : > { %v1011_v56 = vmul.f32 %v1010_v55, %v1962_v9  ;;  %v1019_v57 = vmul.f32 %v1457_v52, %v1018_v16  ;;  %v822_v58 = vpop.f32.mrf.mxu3 }
 0x1d0   : > { %v823_v61 = vadd.f32 %v822_v58, %v703_v45  ;;  %v706_v25 = vpop.f32.mrf.mxu2 }
 0x1d1   : > { %v1013_v22 = vsel %vm1012_vm7, %v1962_v9, %v1011_v56  ;;  %v1020_v62 = vmul.f32 0.5, %v1019_v57  ;;  %v774_v63 = vpop.f32.mrf.mxu1  ;;  %v1027_v9 = vand.u32 2147483648, %v1972_v33 }
 0x1d2   : > { %v1016_v28 = vsel %vm1014_vm8, %v1015_v59, %v1013_v22  ;;  %v864_v0 = vmul.f32 %v823_v61, %v823_v61  ;;  %v775_v34 = vadd.f32 %v774_v63, %v655_v18  ;;  %v658_v8 = vpop.f32.mrf.mxu0 }
 0x1d3   : > { %1099 = vst [vmem:[%s1894_s8 + $0x50] sm:$0xff] %v1016_v28  ;;  %v1021_v31 = vsub.f32 1.5, %v1020_v62 }
 0x1d4   : > { %v1459_v1 = vpop.eup %1458  ;;  %v1992_v2 = vadd.f32 %v864_v0, %v847_v60  ;;  %v848_v37 = vmul.f32 %v775_v34, %v775_v34 }
 0x1d5   : > { %v1022_v3 = vmul.f32 %v1457_v52, %v1021_v31  ;;  %v1030_v4 = vmul.f32 %v1459_v1, %v1982_v53 }
 0x1d6   : > { %1460 = vrsqrt.f32 %v1992_v2  ;;  %vm1048_vm13 = vcmp.eq.f32.partialorder %v1992_v2, inf  ;;  %vm1050_vm14 = vcmp.eq.f32.partialorder %v1992_v2, 0.0 }
 0x1d7   : > { %v1023_v5 = vmul.f32 %v1022_v3, %v1972_v33  ;;  %v1031_v6 = vmul.f32 %v1459_v1, %v1030_v4  ;;  %v825_v7 = vpop.f32.mrf.mxu3 }
 0x1d8   : > { %v826_v10 = vadd.f32 %v825_v7, %v706_v25  ;;  %v709_v19 = vpop.f32.mrf.mxu2 }
 0x1d9   : > { %v1025_v11 = vsel %vm1024_vm9, %v1972_v33, %v1023_v5  ;;  %v1032_v12 = vmul.f32 0.5, %v1031_v6  ;;  %v777_v13 = vpop.f32.mrf.mxu1 }
 0x1da   : > { %v1028_v14 = vsel %vm1026_vm10, %v1027_v9, %v1025_v11  ;;  %v865_v15 = vmul.f32 %v826_v10, %v826_v10  ;;  %v778_v23 = vadd.f32 %v777_v13, %v658_v8  ;;  %v661_v39 = vpop.f32.mrf.mxu0 }
 0x1db   : > { %1100 = vst [vmem:[%s1894_s8 + $0x58] sm:$0xff] %v1028_v14  ;;  %v1033_v17 = vsub.f32 1.5, %v1032_v12 }
 0x1dc   : > { %v1461_v20 = vpop.eup %1460  ;;  %v882_v21 = vadd.f32 %v865_v15, %v848_v37  ;;  %v849_v33 = vmul.f32 %v778_v23, %v778_v23 }
 0x1dd   : > { %v1034_v24 = vmul.f32 %v1459_v1, %v1033_v17  ;;  %v1042_v26 = vmul.f32 %v1461_v20, %v1992_v2 }
 0x1de   : > { %1462 = vrsqrt.f32 %v882_v21  ;;  %vm1060_vm15 = vcmp.eq.f32.partialorder %v882_v21, inf  ;;  %v1063_v63 = vand.u32 2147483648, %v882_v21  ;;  %vm1062_vm0 = vcmp.eq.f32.partialorder %v882_v21, 0.0 }
 0x1df   : > { %v1035_v27 = vmul.f32 %v1034_v24, %v1982_v53  ;;  %v1043_v29 = vmul.f32 %v1461_v20, %v1042_v26  ;;  %v828_v30 = vpop.f32.mrf.mxu3 }
 0x1e0   : > { %v829_v35 = vadd.f32 %v828_v30, %v709_v19  ;;  %v712_v49 = vpop.f32.mrf.mxu2 }
 0x1e1   : > { %v1037_v36 = vsel %vm1036_vm11, %v1982_v53, %v1035_v27  ;;  %v1044_v38 = vmul.f32 0.5, %v1043_v29  ;;  %v780_v40 = vpop.f32.mrf.mxu1  ;;  %v1051_v53 = vand.u32 2147483648, %v1992_v2 }
 0x1e2   : > { %v1040_v41 = vsel %vm1038_vm12, %v1039_v32, %v1037_v36  ;;  %v866_v42 = vmul.f32 %v829_v35, %v829_v35  ;;  %v781_v46 = vadd.f32 %v780_v40, %v661_v39 }
 0x1e3   : > { %1101 = vst [vmem:[%s1894_s8 + $0x60] sm:$0xff] %v1040_v41  ;;  %v1045_v43 = vsub.f32 1.5, %v1044_v38 }
 0x1e4   : > { %v1463_v44 = vpop.eup %1462  ;;  %v883_v45 = vadd.f32 %v866_v42, %v849_v33  ;;  %v850_v54 = vmul.f32 %v781_v46, %v781_v46 }
 0x1e5   : > { %v1046_v47 = vmul.f32 %v1461_v20, %v1045_v43  ;;  %v1054_v48 = vmul.f32 %v1463_v44, %v882_v21 }
 0x1e6   : > { %1464 = vrsqrt.f32 %v883_v45  ;;  %vm1072_vm1 = vcmp.eq.f32.partialorder %v883_v45, inf  ;;  %v1075_v6 = vand.u32 2147483648, %v883_v45  ;;  %vm1074_vm2 = vcmp.eq.f32.partialorder %v883_v45, 0.0 }
 0x1e7   : > { %v1047_v50 = vmul.f32 %v1046_v47, %v1992_v2  ;;  %v1055_v51 = vmul.f32 %v1463_v44, %v1054_v48  ;;  %v831_v52 = vpop.f32.mrf.mxu3 }
 0x1e8   : > { %v832_v55 = vadd.f32 %v831_v52, %v712_v49 }
 0x1e9   : > { %v1049_v16 = vsel %vm1048_vm13, %v1992_v2, %v1047_v50  ;;  %v1056_v18 = vmul.f32 0.5, %v1055_v51 }
 0x1ea   : > { %v1052_v56 = vsel %vm1050_vm14, %v1051_v53, %v1049_v16  ;;  %v867_v57 = vmul.f32 %v832_v55, %v832_v55 }
 0x1eb   : > { %1102 = vst [vmem:[%s1894_s8 + $0x68] sm:$0xff] %v1052_v56  ;;  %v1057_v58 = vsub.f32 1.5, %v1056_v18 }
 0x1ec   : > { %v1465_v59 = vpop.eup %1464  ;;  %v884_v60 = vadd.f32 %v867_v57, %v850_v54 }
 0x1ed   : > { %v1058_v61 = vmul.f32 %v1463_v44, %v1057_v58  ;;  %v1066_v22 = vmul.f32 %v1465_v59, %v883_v45 }
 0x1ee   : > { %1466 = vrsqrt.f32 %v884_v60  ;;  %vm1084_vm3 = vcmp.eq.f32.partialorder %v884_v60, inf  ;;  %v1087_v12 = vand.u32 2147483648, %v884_v60  ;;  %vm1086_vm4 = vcmp.eq.f32.partialorder %v884_v60, 0.0 }
 0x1ef   : > { %v1059_v62 = vmul.f32 %v1058_v61, %v882_v21  ;;  %v1067_v25 = vmul.f32 %v1465_v59, %v1066_v22 }
 0x1f1   : > { %v1061_v28 = vsel %vm1060_vm15, %v882_v21, %v1059_v62  ;;  %v1068_v0 = vmul.f32 0.5, %v1067_v25 }
 0x1f2   : > { %v1064_v31 = vsel %vm1062_vm0, %v1063_v63, %v1061_v28 }
 0x1f3   : > { %1103 = vst [vmem:[%s1894_s8 + $0x70] sm:$0xff] %v1064_v31  ;;  %v1069_v1 = vsub.f32 1.5, %v1068_v0 }
 0x1f4   : > { %v1467_v2 = vpop.eup %1466 }
 0x1f5   : > { %v1070_v34 = vmul.f32 %v1465_v59, %v1069_v1  ;;  %v1078_v3 = vmul.f32 %v1467_v2, %v884_v60 }
 0x1f7   : > { %v1071_v4 = vmul.f32 %v1070_v34, %v883_v45  ;;  %v1079_v5 = vmul.f32 %v1467_v2, %v1078_v3 }
 0x1f9   : > { %v1073_v7 = vsel %vm1072_vm1, %v883_v45, %v1071_v4  ;;  %v1080_v8 = vmul.f32 0.5, %v1079_v5 }
 0x1fa   : > { %v1076_v9 = vsel %vm1074_vm2, %v1075_v6, %v1073_v7 }
 0x1fb   : > { %1104 = vst [vmem:[%s1894_s8 + $0x78] sm:$0xff] %v1076_v9  ;;  %v1081_v37 = vsub.f32 1.5, %v1080_v8 }
 0x1fd   : > { %v1082_v10 = vmul.f32 %v1467_v2, %v1081_v37 }
 0x1ff   : > { %v1083_v11 = vmul.f32 %v1082_v10, %v884_v60 }
 0x201   : > { %v1085_v13 = vsel %vm1084_vm3, %v884_v60, %v1083_v11 }
 0x202   : > { %v1088_v14 = vsel %vm1086_vm4, %v1087_v12, %v1085_v13 }
 0x203   : > { %1105 = vst [vmem:[%s1894_s8 + $0x80] sm:$0xff] %v1088_v14 }
 0x204 PF: > { %s13_s16 = sadd.s32 1, %s1506_s16   ;;  %s2038_s12 = smov %s1494_s13 }
 0x205   : > { %p10_p10 = scmp.ge.s32.totalorder %s13_s16, 4   ;;  %s2039_s13 = smov %s1570_s21 }
 0x206   : > { %s2040_s14 = smov %s1502_s15  ;;  %s2041_s15 = smov %s2043_s17 }
 0x207   :  { %12 = sbr.rel (!%p10_p10) target bundleno = 3 (0x3), region = 151 }

</bundles_post_ra>
